<compile_context>
chip_gen: v7x
topology: tpu7x:2x2x1
jax: 0.10.0
libtpu: 0.0.40
codegen_flags: <defaults>
</compile_context>

<pallas_src>
import math
import functools

import jax
import jax.numpy as jnp
from jax.experimental import pallas as pl
from jax.experimental.pallas import tpu as pltpu


def _round_up(x, m):
    return ((x + m - 1) // m) * m


def _nac_matmul_kernel(x_ref, w_ref, o_ref, acc_ref):
    """One (tm, tn) output tile, accumulated over the K grid axis."""

    @pl.when(pl.program_id(2) == 0)
    def _init():
        acc_ref[...] = jnp.zeros_like(acc_ref)

    # Clamp the weight tile in-kernel (cheap VPU work under MXU slack).
    w_c = jnp.clip(w_ref[...], -1.0, 1.0)

    # x: (tm, tk), w_c: (tn, tk); contract last dims of both -> (tm, tn).
    # No explicit transpose -> no XLU vxpose relayout before the MXU.
    acc_ref[...] += jax.lax.dot_general(
        x_ref[...],
        w_c,
        dimension_numbers=(((1,), (1,)), ((), ())),
        preferred_element_type=jnp.float32,
    )

    @pl.when(pl.program_id(2) == pl.num_programs(2) - 1)
    def _finalize():
        o_ref[...] = acc_ref[...].astype(o_ref.dtype)


@functools.partial(jax.jit, static_argnames=("tm", "tn", "tk"))
def nac_linear(x, W, *, tm=256, tn=256, tk=512):
    """y = x @ clamp(W, -1, 1).T   with x: (M, K), W: (N, K) -> y: (M, N)."""
    M, K = x.shape
    N, Kw = W.shape
    assert K == Kw, "in_features mismatch"
    assert x.dtype == W.dtype, "x and W must share a dtype"

    # Tile sizes: 8-aligned on M, 128-aligned on N/K (lane-dense output,
    # (8,128) BlockSpec rule), capped at the requested maxima.
    tm = min(tm, _round_up(M, 8))
    tn = min(tn, _round_up(N, 128))
    tk = min(tk, _round_up(K, 128))

    # Zero-pad operands so the grid divides evenly (zeros are exact here).
    Mp, Np, Kp = _round_up(M, tm), _round_up(N, tn), _round_up(K, tk)
    if (Mp, Kp) != (M, K):
        x = jnp.pad(x, ((0, Mp - M), (0, Kp - K)))
    if (Np, Kp) != (N, K):
        W = jnp.pad(W, ((0, Np - N), (0, Kp - K)))

    grid = (Mp // tm, Np // tn, Kp // tk)

    # VMEM budget: double-buffered input tiles + output tile + f32 accumulator.
    itemsize = jnp.dtype(x.dtype).itemsize
    tile_bytes = (
        2 * (tm * tk + tn * tk) * itemsize  # double-buffered x, W tiles
        + 2 * tm * tn * itemsize            # double-buffered output tile
        + tm * tn * 4                       # f32 accumulator scratch
    )
    vmem_limit = min(128 * 1024 * 1024,
                     max(32 * 1024 * 1024, int(tile_bytes * 2)))

    out_padded = pl.pallas_call(
        _nac_matmul_kernel,
        out_shape=jax.ShapeDtypeStruct((Mp, Np), x.dtype),
        grid=grid,
        in_specs=[
            pl.BlockSpec((tm, tk), lambda i, j, k: (i, k)),
            pl.BlockSpec((tn, tk), lambda i, j, k: (j, k)),
        ],
        out_specs=pl.BlockSpec((tm, tn), lambda i, j, k: (i, j)),
        scratch_shapes=[pltpu.VMEM((tm, tn), jnp.float32)],
        compiler_params=pltpu.CompilerParams(
            dimension_semantics=("parallel", "parallel", "arbitrary"),
            vmem_limit_bytes=vmem_limit,
        ),
    )(x, W)

    return out_padded[:M, :N]


def init_weight(key, in_features, out_features, dtype=jnp.float32):
    """Deterministic replica of ReRegualizedLinearNACLayer.reset_parameters."""
    std = math.sqrt(2.0 / (in_features + out_features))
    r = min(0.5, math.sqrt(3.0) * std)
    return jax.random.uniform(
        key, (out_features, in_features), dtype=dtype, minval=-r, maxval=r
    )


def _reference(x, W):
    return x @ jnp.clip(W, -1.0, 1.0).T


if __name__ == "__main__":
    key = jax.random.PRNGKey(0)

    # --- Small demo shape consistent with the module's forward -------------
    batch, in_features, out_features = 8, 32, 16
    kx, kw, key = jax.random.split(key, 3)
    x = jax.random.normal(kx, (batch, in_features), dtype=jnp.float32)
    W = init_weight(kw, in_features, out_features)

    y = jax.block_until_ready(nac_linear(x, W))
    y_ref = _reference(x, W)
    assert y.shape == (batch, out_features)
    assert jnp.allclose(y, y_ref, atol=1e-5, rtol=1e-5)

    # --- Larger, non-aligned shape to exercise multi-tile (M, N, K) grid ---
    M2, K2, N2 = 160, 640, 272
    kx2, kw2 = jax.random.split(key)
    x2 = jax.random.normal(kx2, (M2, K2), dtype=jnp.float32)
    # Scale up so some weights actually hit the clamp bounds.
    W2 = 4.0 * init_weight(kw2, K2, N2)

    y2 = jax.block_until_ready(nac_linear(x2, W2))
    y2_ref = _reference(x2, W2)
    assert y2.shape == (M2, N2)
    assert jnp.allclose(y2, y2_ref, atol=1e-4, rtol=1e-4)

    print("KERNEL_OK")
</pallas_src>

<mosaic_0001>
module attributes {stable_mosaic.version = 11 : i64} {
  func.func @_nac_matmul_kernel(%arg0: i32, %arg1: i32, %arg2: i32, %arg3: memref<8x128xf32, #tpu.memory_space<vmem>>, %arg4: memref<128x128xf32, #tpu.memory_space<vmem>>, %arg5: memref<8x128xf32, #tpu.memory_space<vmem>>, %arg6: memref<8x128xf32, #tpu.memory_space<vmem>>) attributes {dimension_semantics = [#tpu.dimension_semantics<parallel>, #tpu.dimension_semantics<parallel>, #tpu.dimension_semantics<arbitrary>], iteration_bounds = array<i64: 1, 1, 1>, scalar_prefetch = 0 : i64, scratch_operands = 1 : i64, tpu.core_type = #tpu.core_type<tc>, window_params = [{transform_indices = @transform_0, window_bounds = array<i64: 8, 128>}, {transform_indices = @transform_1, window_bounds = array<i64: 128, 128>}, {transform_indices = @transform_2, window_bounds = array<i64: 8, 128>}]} {
    %c0_i32 = arith.constant 0 : i32
    %0 = arith.cmpi eq, %arg2, %c0_i32 : i32
    %1 = arith.extui %0 : i1 to i32
    %c0_i32_0 = arith.constant 0 : i32
    %2 = arith.cmpi ne, %1, %c0_i32_0 : i32
    scf.if %2 {
      %cst_12 = arith.constant 0.000000e+00 : f32
      %16 = vector.broadcast %cst_12 : f32 to vector<8x128xf32>
      %c0_13 = arith.constant 0 : index
      %c0_14 = arith.constant 0 : index
      %17 = vector.load %arg6[%c0_13, %c0_14] : memref<8x128xf32, #tpu.memory_space<vmem>>, vector<8x128xf32>
      tpu.vector_store %arg6[%c0_13, %c0_14], %16 {strides = array<i32>} : memref<8x128xf32, #tpu.memory_space<vmem>>, vector<8x128xf32>,
    } else {
    }
    %c0 = arith.constant 0 : index
    %c0_1 = arith.constant 0 : index
    %3 = vector.load %arg4[%c0, %c0_1] : memref<128x128xf32, #tpu.memory_space<vmem>>, vector<128x128xf32>
    %cst = arith.constant -1.000000e+00 : f32
    %cst_2 = arith.constant 1.000000e+00 : f32
    %4 = vector.broadcast %cst : f32 to vector<128x128xf32>
    %5 = arith.maximumf %4, %3 : vector<128x128xf32>
    %6 = vector.broadcast %cst_2 : f32 to vector<128x128xf32>
    %7 = arith.minimumf %6, %5 : vector<128x128xf32>
    %c0_3 = arith.constant 0 : index
    %c0_4 = arith.constant 0 : index
    %8 = vector.load %arg6[%c0_3, %c0_4] : memref<8x128xf32, #tpu.memory_space<vmem>>, vector<8x128xf32>
    %c0_5 = arith.constant 0 : index
    %c0_6 = arith.constant 0 : index
    %9 = vector.load %arg3[%c0_5, %c0_6] : memref<8x128xf32, #tpu.memory_space<vmem>>, vector<8x128xf32>
    %cst_7 = arith.constant dense<0.000000e+00> : vector<8x128xf32>
    %10 = tpu.matmul %9, %7, %cst_7 {dimension_numbers = #tpu.dot_dimension_numbers<[1], [1], [0], [0], [0, 0, 1, 0], [], []>} : vector<8x128xf32>, vector<128x128xf32>, vector<8x128xf32> -> vector<8x128xf32>
    %11 = arith.addf %8, %10 : vector<8x128xf32>
    %c0_8 = arith.constant 0 : index
    %c0_9 = arith.constant 0 : index
    %12 = vector.load %arg6[%c0_8, %c0_9] : memref<8x128xf32, #tpu.memory_space<vmem>>, vector<8x128xf32>
    tpu.vector_store %arg6[%c0_8, %c0_9], %11 {strides = array<i32>} : memref<8x128xf32, #tpu.memory_space<vmem>>, vector<8x128xf32>,
    %c0_i32_10 = arith.constant 0 : i32
    %13 = arith.cmpi eq, %arg2, %c0_i32_10 : i32
    %14 = arith.extui %13 : i1 to i32
    %c0_i32_11 = arith.constant 0 : i32
    %15 = arith.cmpi ne, %14, %c0_i32_11 : i32
    scf.if %15 {
      %c0_12 = arith.constant 0 : index
      %c0_13 = arith.constant 0 : index
      %16 = vector.load %arg6[%c0_12, %c0_13] : memref<8x128xf32, #tpu.memory_space<vmem>>, vector<8x128xf32>
      %c0_14 = arith.constant 0 : index
      %c0_15 = arith.constant 0 : index
      %17 = vector.load %arg5[%c0_14, %c0_15] : memref<8x128xf32, #tpu.memory_space<vmem>>, vector<8x128xf32>
      tpu.vector_store %arg5[%c0_14, %c0_15], %16 {strides = array<i32>} : memref<8x128xf32, #tpu.memory_space<vmem>>, vector<8x128xf32>,
    } else {
    }
    return
  }
  func.func @transform_0(%arg0: i32, %arg1: i32, %arg2: i32) -> (i32, i32) {
    %c0_i32 = arith.constant 0 : i32
    return %arg0, %arg2 : i32, i32
  }
  func.func @transform_1(%arg0: i32, %arg1: i32, %arg2: i32) -> (i32, i32) {
    %c0_i32 = arith.constant 0 : i32
    return %arg1, %arg2 : i32, i32
  }
  func.func @transform_2(%arg0: i32, %arg1: i32, %arg2: i32) -> (i32, i32) {
    %c0_i32 = arith.constant 0 : i32
    return %arg0, %arg1 : i32, i32
  }
}

</mosaic_0001>

<bundles_post_ra>
// kernel: nac_linear.1
= control target key start
LH: loop header
LB: loop body
LE: loop exit
PB: predicated region body
PF: predicated region fallthrough
CT: control target
= control target key end

     0   :  { %v278_v2 = vmov 0.0|0.0   ;;  %vm279_vm0 = vmmov 0   ;;  %v280_v5 = vmov 0.0   ;;  %s360_s0 = inlined_call_operand.vmem [shape: f32[8,128], index: 0, kind: input, shape index: {}]   ;;  %s361_s1 = inlined_call_operand.vmem [shape: f32[128,128], index: 1, kind: input, shape index: {}]   ;;  %s362_s2 = inlined_call_operand.hbm [shape: f32[8,128], index: 2, kind: output, shape index: {}]  }
   0x1   :  { %v17_v0 = vld [vmem:[%s361_s1] sm:$0xff]  ;;  %v18_v1 = vld [vmem:[%s361_s1 + $0x8] sm:$0xff]  ;;  %226 = vmatprep.subr.bf16.mxu0 %v278_v2  ;;  %223 = vmatprep.mubr.msk.f32.mxu0 %vm279_vm0, %v280_v5  ;;  %v19_v6 = vld [vmem:[%s361_s1 + $0x10] sm:$0xff] }
   0x2   :  { %v158_v3 = vclamps-f32 %v17_v0, 1.0  ;;  %v159_v4 = vclamps-f32 %v18_v1, 1.0  ;;  %v20_v7 = vld [vmem:[%s361_s1 + $0x18] sm:$0xff]  ;;  %v160_v9 = vclamps-f32 %v19_v6, 1.0 }
   0x3   :  { %v161_v10 = vclamps-f32 %v20_v7, 1.0 }
   0x4   :  { %v227_v8 = vpack.c.bf16 %v159_v4, %v158_v3 }
   0x6   :  { %228 = vmatpush3.bf16.xpose.msra.mxu0 %v227_v8 }
   0x7   :  { %229 = vmatprep.subr.bf16.mxu0 %v278_v2 }
   0x8   :  { %7 = vsyncpa [#allocation4], 0  ;;  %v230_v11 = vpack.c.bf16 %v161_v10, %v160_v9  ;;  %v21_v12 = vld [vmem:[%s361_s1 + $0x20] sm:$0xff]  ;;  %v22_v13 = vld [vmem:[%s361_s1 + $0x28] sm:$0xff]  ;;  %s281_s15 = smov [#allocation3]  }
   0x9   :  { %v162_v14 = vclamps-f32 %v21_v12, 1.0  ;;  %v163_v15 = vclamps-f32 %v22_v13, 1.0  ;;  %v23_v17 = vld [vmem:[%s361_s1 + $0x30] sm:$0xff]  ;;  %v24_v18 = vld [vmem:[%s361_s1 + $0x38] sm:$0xff]  ;;  %v25_v22 = vld [vmem:[%s361_s1 + $0x40] sm:$0xff]  ;;  %s150_s16 = sshll.u32 %s281_s15, 4  ;;  %s151_s16 = int_to_ptr.vmem [resolvable:$true] %s150_s16 }
   0xa   :  { %v164_v19 = vclamps-f32 %v23_v17, 1.0  ;;  %v165_v20 = vclamps-f32 %v24_v18, 1.0  ;;  %v26_v23 = vld [vmem:[%s361_s1 + $0x48] sm:$0xff]  ;;  %v166_v24 = vclamps-f32 %v25_v22, 1.0  ;;  %v27_v27 = vld [vmem:[%s361_s1 + $0x50] sm:$0xff]  ;;  %v28_v28 = vld [vmem:[%s361_s1 + $0x58] sm:$0xff]  ;;  %p259_p1 = scmp.lt.s32.totalorder %s151_s16, %s151_s16 }
   0xb   :  { %v233_v16 = vpack.c.bf16 %v163_v15, %v162_v14  ;;  %v167_v25 = vclamps-f32 %v26_v23, 1.0  ;;  %v168_v29 = vclamps-f32 %v27_v27, 1.0  ;;  %v169_v30 = vclamps-f32 %v28_v28, 1.0  ;;  %v29_v32 = vld [vmem:[%s361_s1 + $0x60] sm:$0xff]  ;;  %v30_v33 = vld [vmem:[%s361_s1 + $0x68] sm:$0xff]  ;;  %v31_v37 = vld [vmem:[%s361_s1 + $0x70] sm:$0xff] }
   0xc   :  { %v236_v21 = vpack.c.bf16 %v165_v20, %v164_v19  ;;  %v170_v34 = vclamps-f32 %v29_v32, 1.0  ;;  %v171_v35 = vclamps-f32 %v30_v33, 1.0  ;;  %v32_v38 = vld [vmem:[%s361_s1 + $0x78] sm:$0xff]  ;;  %v172_v39 = vclamps-f32 %v31_v37, 1.0  ;;  %v66_v42 = vld [vmem:[%s360_s0] sm:$0xff]  ;;  %s254_s17 = scalar_lea.vmem %s151_s16, 128 }
   0xd   :  { %v239_v26 = vpack.c.bf16 %v167_v25, %v166_v24  ;;  %v242_v31 = vpack.c.bf16 %v169_v30, %v168_v29  ;;  %v173_v40 = vclamps-f32 %v32_v38, 1.0  ;;  %p255_p0 = scmp.ne.s32.totalorder %s151_s16, %s254_s17  ;;  %p260_p2 = scmp.lt.s32.totalorder %s254_s17, %s254_s17 }
   0xe   :  { %231 = vmatpush3.bf16.xpose.msra.mxu0 %v230_v11  ;;  %v245_v36 = vpack.c.bf16 %v171_v35, %v170_v34 }
   0xf   :  { %232 = vmatprep.subr.bf16.mxu0 %v278_v2  ;;  %v248_v41 = vpack.c.bf16 %v173_v40, %v172_v39  ;;  %p261_p3 = por %p260_p2, %p259_p1 }
  0x11   :  { %p262_p4 = pnand %p261_p3, %p255_p0 }
  0x16   :  { %234 = vmatpush3.bf16.xpose.msra.mxu0 %v233_v16 }
  0x17   :  { %235 = vmatprep.subr.bf16.mxu0 %v278_v2 }
  0x1e   :  { %237 = vmatpush3.bf16.xpose.msra.mxu0 %v236_v21 }
  0x1f   :  { %238 = vmatprep.subr.bf16.mxu0 %v278_v2 }
  0x26   :  { %240 = vmatpush3.bf16.xpose.msra.mxu0 %v239_v26 }
  0x27   :  { %241 = vmatprep.subr.bf16.mxu0 %v278_v2 }
  0x2e   :  { %243 = vmatpush3.bf16.xpose.msra.mxu0 %v242_v31 }
  0x2f   :  { %244 = vmatprep.subr.bf16.mxu0 %v278_v2 }
  0x36   :  { %246 = vmatpush3.bf16.xpose.msra.mxu0 %v245_v36 }
  0x37   :  { %247 = vmatprep.subr.bf16.mxu0 %v278_v2 }
  0x3e   :  { %249 = vmatpush3.bf16.xpose.msra.mxu0 %v248_v41 }
  0x45   :  { %224 = vmatmul.mubr.f32.vlgmr.msra.gmra.mrb[0].mxu0 %v66_v42 }
 0x118   :  { %v133_v43 = vpop.f32.mrb[0].mxu0 }
 0x119   :  { %143 = vst [vmem:[#allocation3] sm:$0xff] %v133_v43  ;;  %v225_v44 = vpop.f32.mrb[1].mxu0 }
 0x11a   :  { %265 = shalt.err (!%p262_p4)
}
 0x11b   :  { %s266_s19 = scalar_lea.hbm %s362_s2, 128 }
 0x11c   :  { %p267_p5 = scmp.ne.s32.totalorder %s362_s2, %s266_s19  ;;  %p270_p6 = scmp.lt.u32.totalorder %s266_s19, %s362_s2 }
 0x11e   :  { %p272_p7 = pnand %p270_p6, %p267_p5 }
 0x120   :  { %275 = shalt.err (!%p272_p7)
}
 0x121   :  { %153 = dma.vmem_to_hbm [thread:$0]  %s151_s16, 128, %s362_s2, [#allocation4]  }
 0x122   :  { %276 = dma.done.wait [#allocation4], 128  }
 0x123   :  { %277 = vsyncadd [#allocation4], 4294967168 }
 0x124   :  { %157 = vsyncpa [#allocation4], 1 }

</bundles_post_ra>
